<compile_context>
chip_gen: v5e
topology: v5e:2x2
jax: 0.10.0
libtpu: 0.0.40
codegen_flags: <defaults>
</compile_context>

<pallas_src>
import jax
import jax.numpy as jnp
from jax.experimental import pallas as pl
from jax.experimental.pallas import tpu as pltpu

_LANE = 128       # vreg lane width: feature dims padded to multiples of this
_BN_EPS = 1e-5    # PyTorch BatchNorm1d default eps


def _pad_axis(a, axis, mult):
    size = a.shape[axis]
    pad = (-size) % mult
    if pad == 0:
        return a
    widths = [(0, 0)] * a.ndim
    widths[axis] = (0, pad)
    return jnp.pad(a, widths)


def _pick_tile(dim, want):
    """Largest multiple of 128 that divides `dim` (a multiple of 128) and is
    <= max(want, 128)."""
    t = max((min(want, dim) // _LANE) * _LANE, _LANE)
    while dim % t:
        t -= _LANE
    return t


def _mlp_kernel(x_ref, w1_ref, gamma_ref, beta_ref, w2_ref, b2_ref,
                o_ref, a_ref, acc_ref):
    """Grid step (k = hidden tile [outer], j = out tile [inner]) of
    Linear -> BatchNorm1d(train-mode stats) -> ReLU -> Linear."""
    k = pl.program_id(0)
    j = pl.program_id(1)

    # Linear1 + BN + ReLU: computed once per hidden tile (at the first out
    # tile), cached in bf16 VMEM and reused by every out tile of this k round.
    @pl.when(j == 0)
    def _():
        h = jnp.dot(x_ref[...], w1_ref[...],
                    preferred_element_type=jnp.float32)        # [B, tH] f32
        # Train-mode biased batch statistics.  The full batch is resident in
        # every grid step and stats are per-feature, so per-tile stats are
        # exact.  (b1 omitted: it cancels exactly in (h - mean).)
        inv_b = 1.0 / h.shape[0]
        mean = jnp.sum(h, axis=0, keepdims=True) * inv_b
        centered = h - mean
        var = jnp.sum(centered * centered, axis=0, keepdims=True) * inv_b
        scale = jax.lax.rsqrt(var + _BN_EPS) * gamma_ref[...]  # [1, tH]
        a_ref[...] = jnp.maximum(centered * scale + beta_ref[...],
                                 0.0).astype(a_ref.dtype)

    # Linear2 partial product for (hidden tile k, out tile j), f32 accumulate.
    partial = jnp.dot(a_ref[...], w2_ref[...],
                      preferred_element_type=jnp.float32)       # [B, tOut]

    @pl.when(k == 0)
    def _():
        acc_ref[j] = partial

    @pl.when(k > 0)
    def _():
        acc_ref[j] += partial

    @pl.when(k == pl.num_programs(0) - 1)
    def _():
        o_ref[...] = (acc_ref[j] + b2_ref[...]).astype(o_ref.dtype)


def prepare_mlp_params(w1, b1, gamma, beta, w2, b2):
    """One-time parameter prep (model-init time, not the per-step path):
      * transpose PyTorch [out, in] Linear weights to [in, out],
      * zero-pad every feature axis to a multiple of 128 lanes,
      * store the matmul weights in bfloat16 (MXU operands); BN affine and
        the output bias stay float32.
    `b1` is accepted for API parity with nn.Linear but is NOT used: a
    per-feature constant added before train-mode BatchNorm cancels exactly in
    (h - mean), so it has no effect on the forward output.
    """
    del b1  # mathematically a no-op under train-mode BatchNorm
    hidden = w1.shape[0]
    out = w2.shape[0]
    w1_t = _pad_axis(_pad_axis(jnp.asarray(w1, jnp.float32).T, 0, _LANE), 1, _LANE)
    w2_t = _pad_axis(_pad_axis(jnp.asarray(w2, jnp.float32).T, 0, _LANE), 1, _LANE)
    g_p = _pad_axis(jnp.asarray(gamma, jnp.float32).reshape(1, hidden), 1, _LANE)
    be_p = _pad_axis(jnp.asarray(beta, jnp.float32).reshape(1, hidden), 1, _LANE)
    b2_p = _pad_axis(jnp.asarray(b2, jnp.float32).reshape(1, out), 1, _LANE)
    return dict(w1=w1_t.astype(jnp.bfloat16), w2=w2_t.astype(jnp.bfloat16),
                gamma=g_p, beta=be_p, b2=b2_p, out_size=out)


def mlp_forward(x, params, *, tile_h=512, tile_out=256,
                vmem_limit_bytes=48 * 1024 * 1024):
    """x: [B, In] float32.  params: output of prepare_mlp_params."""
    w1, w2 = params["w1"], params["w2"]
    gamma, beta, b2 = params["gamma"], params["beta"], params["b2"]
    out_size = params["out_size"]

    batch = x.shape[0]
    in_p, h_p = w1.shape
    out_p = w2.shape[1]

    # Feature axis padded; batch axis is NEVER padded (BN stats invariant).
    x_p = _pad_axis(jnp.asarray(x, jnp.float32), 1, _LANE).astype(jnp.bfloat16)
    assert x_p.shape[1] == in_p, "x feature dim does not match prepared weights"

    t_h = _pick_tile(h_p, tile_h)
    t_out = _pick_tile(out_p, tile_out)
    n_k = h_p // t_h
    n_j = out_p // t_out
    grid = (n_k, n_j)   # hidden tiles (outer) x out tiles (inner)

    out_padded = pl.pallas_call(
        _mlp_kernel,
        out_shape=jax.ShapeDtypeStruct((batch, out_p), jnp.float32),
        grid_spec=pltpu.PrefetchScalarGridSpec(
            num_scalar_prefetch=0,
            grid=grid,
            in_specs=[
                pl.BlockSpec((batch, in_p), lambda k, j: (0, 0)),   # x (resident, bf16)
                pl.BlockSpec((in_p, t_h), lambda k, j: (0, k)),     # W1 tile (bf16) - once per k
                pl.BlockSpec((1, t_h), lambda k, j: (0, k)),        # gamma tile
                pl.BlockSpec((1, t_h), lambda k, j: (0, k)),        # beta tile
                pl.BlockSpec((t_h, t_out), lambda k, j: (k, j)),    # W2 tile (bf16) - once total
                pl.BlockSpec((1, t_out), lambda k, j: (0, j)),      # b2 tile
            ],
            out_specs=pl.BlockSpec((batch, t_out), lambda k, j: (0, j)),
            scratch_shapes=[
                pltpu.VMEM((batch, t_h), jnp.bfloat16),             # cached ReLU(BN(x@W1)) tile
                pltpu.VMEM((n_j, batch, t_out), jnp.float32),       # per-out-tile accumulators
            ],
        ),
        compiler_params=pltpu.CompilerParams(
            # Both axes carry scratch state across steps (activation cache
            # across j, accumulators across k) -> keep them "arbitrary" so v7x
            # megacore never shards either axis across TensorCores.
            dimension_semantics=("arbitrary", "arbitrary"),
            vmem_limit_bytes=vmem_limit_bytes,
        ),
    )(x_p, w1, gamma, beta, w2, b2)

    return out_padded[:, :out_size]


def _reference(x, w1, b1, gamma, beta, w2, b2):
    """Pure-JAX f32 reference with PyTorch train-mode BatchNorm1d semantics."""
    h = x @ w1.T + b1
    mu = jnp.mean(h, axis=0, keepdims=True)
    var = jnp.mean((h - mu) ** 2, axis=0, keepdims=True)
    h = (h - mu) / jnp.sqrt(var + _BN_EPS) * gamma + beta
    h = jnp.maximum(h, 0.0)
    return h @ w2.T + b2


def _make_case(key, batch, input_size, hidden_size, output_size):
    k_x, k_w1, k_b1, k_w2, k_b2, k_be = jax.random.split(key, 6)
    x = jax.random.normal(k_x, (batch, input_size), dtype=jnp.float32)
    bound1 = 1.0 / (input_size ** 0.5)
    w1 = jax.random.uniform(k_w1, (hidden_size, input_size),
                            minval=-bound1, maxval=bound1, dtype=jnp.float32)
    b1 = jax.random.uniform(k_b1, (hidden_size,),
                            minval=-bound1, maxval=bound1, dtype=jnp.float32)
    gamma = jnp.ones((hidden_size,), dtype=jnp.float32)
    beta = 0.1 * jax.random.normal(k_be, (hidden_size,), dtype=jnp.float32)
    bound2 = 1.0 / (hidden_size ** 0.5)
    w2 = jax.random.uniform(k_w2, (output_size, hidden_size),
                            minval=-bound2, maxval=bound2, dtype=jnp.float32)
    b2 = jax.random.uniform(k_b2, (output_size,),
                            minval=-bound2, maxval=bound2, dtype=jnp.float32)
    return x, w1, b1, gamma, beta, w2, b2


if __name__ == "__main__":
    key = jax.random.PRNGKey(0)
    k1, k2 = jax.random.split(key)

    # Case 1: shapes consistent with the module's forward (single-tile grid).
    batch, input_size, hidden_size, output_size = 8, 32, 64, 16
    x, w1, b1, gamma, beta, w2, b2 = _make_case(k1, batch, input_size,
                                                hidden_size, output_size)
    params = prepare_mlp_params(w1, b1, gamma, beta, w2, b2)
    out = mlp_forward(x, params)
    jax.block_until_ready(out)
    ref = _reference(x, w1, b1, gamma, beta, w2, b2)
    assert out.shape == (batch, output_size)
    # bf16 MXU operands -> compare against the f32 reference with bf16 budget.
    assert jnp.allclose(out, ref, atol=3e-2, rtol=3e-2), (
        f"case1 max abs err {jnp.max(jnp.abs(out - ref))}")

    # Case 2: slightly larger feature dims + forced 128 tiles to exercise the
    # multi-tile (K=3, J=2) grid, the activation cache and the accumulators.
    batch2, input2, hidden2, output2 = 8, 48, 300, 200
    x2, w1b, b1b, gb, bb, w2b, b2b = _make_case(k2, batch2, input2,
                                                hidden2, output2)
    params2 = prepare_mlp_params(w1b, b1b, gb, bb, w2b, b2b)
    out2 = mlp_forward(x2, params2, tile_h=128, tile_out=128)
    jax.block_until_ready(out2)
    ref2 = _reference(x2, w1b, b1b, gb, bb, w2b, b2b)
    assert out2.shape == (batch2, output2)
    assert jnp.allclose(out2, ref2, atol=3e-2, rtol=3e-2), (
        f"case2 max abs err {jnp.max(jnp.abs(out2 - ref2))}")

    print("KERNEL_OK")
</pallas_src>

<mosaic_0001>
module attributes {stable_mosaic.version = 11 : i64} {
  func.func @_mlp_kernel(%arg0: i32, %arg1: i32, %arg2: memref<8x128xbf16, #tpu.memory_space<vmem>>, %arg3: memref<128x128xbf16, #tpu.memory_space<vmem>>, %arg4: memref<1x128xf32, #tpu.memory_space<vmem>>, %arg5: memref<1x128xf32, #tpu.memory_space<vmem>>, %arg6: memref<128x128xbf16, #tpu.memory_space<vmem>>, %arg7: memref<1x128xf32, #tpu.memory_space<vmem>>, %arg8: memref<8x128xf32, #tpu.memory_space<vmem>>, %arg9: memref<8x128xbf16, #tpu.memory_space<vmem>>, %arg10: memref<1x8x128xf32, #tpu.memory_space<vmem>>) attributes {dimension_semantics = [#tpu.dimension_semantics<arbitrary>, #tpu.dimension_semantics<arbitrary>], iteration_bounds = array<i64: 1, 1>, scalar_prefetch = 0 : i64, scratch_operands = 2 : i64, tpu.core_type = #tpu.core_type<tc>, window_params = [{pipeline_mode = #tpu.pipeline_mode<synchronous>, transform_indices = @transform_0, window_bounds = array<i64: 8, 128>}, {transform_indices = @transform_1, window_bounds = array<i64: 128, 128>}, {transform_indices = @transform_2, window_bounds = array<i64: 1, 128>}, {transform_indices = @transform_3, window_bounds = array<i64: 1, 128>}, {transform_indices = @transform_4, window_bounds = array<i64: 128, 128>}, {transform_indices = @transform_5, window_bounds = array<i64: 1, 128>}, {transform_indices = @transform_6, window_bounds = array<i64: 8, 128>}]} {
    %c0_i32 = arith.constant 0 : i32
    %0 = arith.cmpi eq, %arg1, %c0_i32 : i32
    %1 = arith.extui %0 : i1 to i32
    %c0_i32_0 = arith.constant 0 : i32
    %2 = arith.cmpi ne, %1, %c0_i32_0 : i32
    scf.if %2 {
      %c0_10 = arith.constant 0 : index
      %c0_11 = arith.constant 0 : index
      %15 = vector.load %arg2[%c0_10, %c0_11] : memref<8x128xbf16, #tpu.memory_space<vmem>>, vector<8x128xbf16>
      %c0_12 = arith.constant 0 : index
      %c0_13 = arith.constant 0 : index
      %16 = vector.load %arg3[%c0_12, %c0_13] : memref<128x128xbf16, #tpu.memory_space<vmem>>, vector<128x128xbf16>
      %cst_14 = arith.constant dense<0.000000e+00> : vector<8x128xf32>
      %17 = tpu.matmul %15, %16, %cst_14 {dimension_numbers = #tpu.dot_dimension_numbers<[1], [0], [0], [1], [0, 0, 1, 1], [], []>} : vector<8x128xbf16>, vector<128x128xbf16>, vector<8x128xf32> -> vector<8x128xf32>
      %cst_15 = arith.constant dense<0.000000e+00> : vector<128xf32>
      %18 = vector.multi_reduction <add>, %17, %cst_15 [0] : vector<8x128xf32> to vector<128xf32>
      %19 = vector.shape_cast %18 : vector<128xf32> to vector<1x128xf32>
      %cst_16 = arith.constant 1.250000e-01 : f32
      %20 = vector.broadcast %cst_16 : f32 to vector<1x128xf32>
      %21 = arith.mulf %19, %20 : vector<1x128xf32>
      %22 = vector.broadcast %21 : vector<1x128xf32> to vector<8x128xf32>
      %23 = arith.subf %17, %22 : vector<8x128xf32>
      %24 = arith.mulf %23, %23 : vector<8x128xf32>
      %cst_17 = arith.constant dense<0.000000e+00> : vector<128xf32>
      %25 = vector.multi_reduction <add>, %24, %cst_17 [0] : vector<8x128xf32> to vector<128xf32>
      %26 = vector.shape_cast %25 : vector<128xf32> to vector<1x128xf32>
      %cst_18 = arith.constant 1.250000e-01 : f32
      %27 = vector.broadcast %cst_18 : f32 to vector<1x128xf32>
      %28 = arith.mulf %26, %27 : vector<1x128xf32>
      %cst_19 = arith.constant 9.99999974E-6 : f32
      %29 = vector.broadcast %cst_19 : f32 to vector<1x128xf32>
      %30 = arith.addf %28, %29 : vector<1x128xf32>
      %31 = math.rsqrt %30 : vector<1x128xf32>
      %c0_20 = arith.constant 0 : index
      %c0_21 = arith.constant 0 : index
      %32 = vector.load %arg4[%c0_20, %c0_21] : memref<1x128xf32, #tpu.memory_space<vmem>>, vector<1x128xf32>
      %33 = arith.mulf %31, %32 : vector<1x128xf32>
      %34 = vector.broadcast %33 : vector<1x128xf32> to vector<8x128xf32>
      %35 = arith.mulf %23, %34 : vector<8x128xf32>
      %c0_22 = arith.constant 0 : index
      %c0_23 = arith.constant 0 : index
      %36 = vector.load %arg5[%c0_22, %c0_23] : memref<1x128xf32, #tpu.memory_space<vmem>>, vector<1x128xf32>
      %37 = vector.broadcast %36 : vector<1x128xf32> to vector<8x128xf32>
      %38 = arith.addf %35, %37 : vector<8x128xf32>
      %cst_24 = arith.constant 0.000000e+00 : f32
      %39 = vector.broadcast %cst_24 : f32 to vector<8x128xf32>
      %40 = arith.maximumf %38, %39 : vector<8x128xf32>
      %41 = arith.truncf %40 : vector<8x128xf32> to vector<8x128xbf16>
      %c0_25 = arith.constant 0 : index
      %c0_26 = arith.constant 0 : index
      %42 = vector.load %arg9[%c0_25, %c0_26] : memref<8x128xbf16, #tpu.memory_space<vmem>>, vector<8x128xbf16>
      tpu.vector_store %arg9[%c0_25, %c0_26], %41 {strides = array<i32>} : memref<8x128xbf16, #tpu.memory_space<vmem>>, vector<8x128xbf16>,
    } else {
    }
    %c0 = arith.constant 0 : index
    %c0_1 = arith.constant 0 : index
    %3 = vector.load %arg9[%c0, %c0_1] : memref<8x128xbf16, #tpu.memory_space<vmem>>, vector<8x128xbf16>
    %c0_2 = arith.constant 0 : index
    %c0_3 = arith.constant 0 : index
    %4 = vector.load %arg6[%c0_2, %c0_3] : memref<128x128xbf16, #tpu.memory_space<vmem>>, vector<128x128xbf16>
    %cst = arith.constant dense<0.000000e+00> : vector<8x128xf32>
    %5 = tpu.matmul %3, %4, %cst {dimension_numbers = #tpu.dot_dimension_numbers<[1], [0], [0], [1], [0, 0, 1, 1], [], []>} : vector<8x128xbf16>, vector<128x128xbf16>, vector<8x128xf32> -> vector<8x128xf32>
    %c0_i32_4 = arith.constant 0 : i32
    %6 = arith.cmpi eq, %arg0, %c0_i32_4 : i32
    %7 = arith.extui %6 : i1 to i32
    %c0_i32_5 = arith.constant 0 : i32
    %8 = arith.cmpi ne, %7, %c0_i32_5 : i32
    scf.if %8 {
      %15 = arith.index_cast %arg1 : i32 to index
      %c0_10 = arith.constant 0 : index
      %c0_11 = arith.constant 0 : index
      %16 = vector.load %arg10[%15, %c0_10, %c0_11] : memref<1x8x128xf32, #tpu.memory_space<vmem>>, vector<1x8x128xf32>
      %17 = vector.shape_cast %16 : vector<1x8x128xf32> to vector<8x128xf32>
      %18 = vector.shape_cast %5 : vector<8x128xf32> to vector<1x8x128xf32>
      tpu.vector_store %arg10[%15, %c0_10, %c0_11], %18 {strides = array<i32>} : memref<1x8x128xf32, #tpu.memory_space<vmem>>, vector<1x8x128xf32>,
    } else {
    }
    %c0_i32_6 = arith.constant 0 : i32
    %9 = arith.cmpi sgt, %arg0, %c0_i32_6 : i32
    %10 = arith.extui %9 : i1 to i32
    %c0_i32_7 = arith.constant 0 : i32
    %11 = arith.cmpi ne, %10, %c0_i32_7 : i32
    scf.if %11 {
      %15 = arith.index_cast %arg1 : i32 to index
      %c0_10 = arith.constant 0 : index
      %c0_11 = arith.constant 0 : index
      %16 = vector.load %arg10[%15, %c0_10, %c0_11] : memref<1x8x128xf32, #tpu.memory_space<vmem>>, vector<1x8x128xf32>
      %17 = vector.shape_cast %16 : vector<1x8x128xf32> to vector<8x128xf32>
      %18 = arith.addf %17, %5 : vector<8x128xf32>
      %19 = arith.index_cast %arg1 : i32 to index
      %c0_12 = arith.constant 0 : index
      %c0_13 = arith.constant 0 : index
      %20 = vector.load %arg10[%19, %c0_12, %c0_13] : memref<1x8x128xf32, #tpu.memory_space<vmem>>, vector<1x8x128xf32>
      %21 = vector.shape_cast %20 : vector<1x8x128xf32> to vector<8x128xf32>
      %22 = vector.shape_cast %18 : vector<8x128xf32> to vector<1x8x128xf32>
      tpu.vector_store %arg10[%19, %c0_12, %c0_13], %22 {strides = array<i32>} : memref<1x8x128xf32, #tpu.memory_space<vmem>>, vector<1x8x128xf32>,
    } else {
    }
    %c0_i32_8 = arith.constant 0 : i32
    %12 = arith.cmpi eq, %arg0, %c0_i32_8 : i32
    %13 = arith.extui %12 : i1 to i32
    %c0_i32_9 = arith.constant 0 : i32
    %14 = arith.cmpi ne, %13, %c0_i32_9 : i32
    scf.if %14 {
      %15 = arith.index_cast %arg1 : i32 to index
      %c0_10 = arith.constant 0 : index
      %c0_11 = arith.constant 0 : index
      %16 = vector.load %arg10[%15, %c0_10, %c0_11] : memref<1x8x128xf32, #tpu.memory_space<vmem>>, vector<1x8x128xf32>
      %17 = vector.shape_cast %16 : vector<1x8x128xf32> to vector<8x128xf32>
      %c0_12 = arith.constant 0 : index
      %c0_13 = arith.constant 0 : index
      %18 = vector.load %arg7[%c0_12, %c0_13] : memref<1x128xf32, #tpu.memory_space<vmem>>, vector<1x128xf32>
      %19 = vector.broadcast %18 : vector<1x128xf32> to vector<8x128xf32>
      %20 = arith.addf %17, %19 : vector<8x128xf32>
      %c0_14 = arith.constant 0 : index
      %c0_15 = arith.constant 0 : index
      %21 = vector.load %arg8[%c0_14, %c0_15] : memref<8x128xf32, #tpu.memory_space<vmem>>, vector<8x128xf32>
      tpu.vector_store %arg8[%c0_14, %c0_15], %20 {strides = array<i32>} : memref<8x128xf32, #tpu.memory_space<vmem>>, vector<8x128xf32>,
    } else {
    }
    return
  }
  func.func @transform_0(%arg0: i32, %arg1: i32) -> (i32, i32) {
    %c0_i32 = arith.constant 0 : i32
    %c0_i32_0 = arith.constant 0 : i32
    %c0_i32_1 = arith.constant 0 : i32
    return %c0_i32, %c0_i32_0 : i32, i32
  }
  func.func @transform_1(%arg0: i32, %arg1: i32) -> (i32, i32) {
    %c0_i32 = arith.constant 0 : i32
    %c0_i32_0 = arith.constant 0 : i32
    return %c0_i32, %arg0 : i32, i32
  }
  func.func @transform_2(%arg0: i32, %arg1: i32) -> (i32, i32) {
    %c0_i32 = arith.constant 0 : i32
    %c0_i32_0 = arith.constant 0 : i32
    return %c0_i32, %arg0 : i32, i32
  }
  func.func @transform_3(%arg0: i32, %arg1: i32) -> (i32, i32) {
    %c0_i32 = arith.constant 0 : i32
    %c0_i32_0 = arith.constant 0 : i32
    return %c0_i32, %arg0 : i32, i32
  }
  func.func @transform_4(%arg0: i32, %arg1: i32) -> (i32, i32) {
    %c0_i32 = arith.constant 0 : i32
    return %arg0, %arg1 : i32, i32
  }
  func.func @transform_5(%arg0: i32, %arg1: i32) -> (i32, i32) {
    %c0_i32 = arith.constant 0 : i32
    %c0_i32_0 = arith.constant 0 : i32
    return %c0_i32, %arg1 : i32, i32
  }
  func.func @transform_6(%arg0: i32, %arg1: i32) -> (i32, i32) {
    %c0_i32 = arith.constant 0 : i32
    %c0_i32_0 = arith.constant 0 : i32
    return %c0_i32, %arg1 : i32, i32
  }
}

</mosaic_0001>

<bundles_post_ra>
// kernel: tpu_custom_call.1
= control target key start
LH: loop header
LB: loop body
LE: loop exit
PB: predicated region body
PF: predicated region fallthrough
CT: control target
= control target key end

     0   :  { %11 = vsyncpa [#allocation5], 0  ;;  %s568_s0 = inlined_call_operand.hbm [shape: bf16[8,128], index: 0, kind: input, shape index: {}]   ;;  %s569_s1 = inlined_call_operand.hbm [shape: bf16[128,128], index: 1, kind: input, shape index: {}]   ;;  %s570_s2 = inlined_call_operand.vmem [shape: f32[1,128], index: 2, kind: input, shape index: {}]   ;;  %s571_s3 = inlined_call_operand.vmem [shape: f32[1,128], index: 3, kind: input, shape index: {}]   ;;  %s572_s4 = inlined_call_operand.hbm [shape: bf16[128,128], index: 4, kind: input, shape index: {}]   ;;  %s573_s5 = inlined_call_operand.vmem [shape: f32[1,128], index: 5, kind: input, shape index: {}]   ;;  %s574_s6 = inlined_call_operand.hbm [shape: f32[8,128], index: 6, kind: output, shape index: {}]  }
   0x1   :  { %12 = vsyncpa [#allocation8], 0  ;;  %s29_s23 = sshll.u32 %s569_s1, 4  ;;  %s30_s23 = int_to_ptr.hbm [resolvable:$true] %s29_s23 }
   0x2   :  { %13 = vsyncpa [#allocation6], 0  ;;  %s506_s24 = smov [#allocation7]   ;;  %s19_s28 = sshll.u32 %s568_s0, 4  ;;  %s20_s28 = int_to_ptr.hbm [resolvable:$true] %s19_s28 }
   0x3   :  { %s31_s25 = sshll.u32 %s506_s24, 4  ;;  %s507_s29 = smov 64   ;;  %s32_s25 = int_to_ptr.vmem [resolvable:$true] %s31_s25 }
   0x4   :  { %s508_s30 = smov 4   ;;  %s509_s7 = smov [#allocation4]  }
   0x5   :  { %37 = dma.hbm_to_vmem [thread:$0]  %s30_s23, 1024, %s32_s25, [#allocation8], %s507_s29, %s507_s29, %s508_s30  }
   0x6   :  { %s21_s8 = sshll.u32 %s509_s7, 4  ;;  %s46_s11 = sshll.u32 %s572_s4, 4  ;;  %s22_s8 = int_to_ptr.vmem [resolvable:$true] %s21_s8  ;;  %s47_s11 = int_to_ptr.hbm [resolvable:$true] %s46_s11 }
   0x7   :  { %24 = dma.hbm_to_vmem [thread:$0]  %s20_s28, 64, %s22_s8, [#allocation5]  }
   0x8   :  { %s510_s1 = smov [#allocation9]  }
   0x9   :  { %s48_s12 = sshll.u32 %s510_s1, 4  ;;  %s49_s12 = int_to_ptr.vmem [resolvable:$true] %s48_s12 }
   0xa   :  { %54 = dma.hbm_to_vmem [thread:$0]  %s47_s11, 1024, %s49_s12, [#allocation8], %s507_s29, %s507_s29, %s508_s30  }
   0xb   :  { %500 = dma.done.wait [#allocation5], 64  }
   0xc   :  { %501 = vsyncadd [#allocation5], 4294967232 }
   0xd   :  { %502 = dma.done.wait [#allocation8], 2048  }
   0xe   :  { %503 = vsyncadd [#allocation8], 4294965248  ;;  %v385_v0 = vld [vmem:[#allocation7 + $0x38] sm:$0xff]  ;;  %v384_v1 = vld [vmem:[#allocation7 + $0x30] sm:$0xff]  ;;  %s303_s20 = sshll.u32 %s574_s6, 4  ;;  %s304_s20 = int_to_ptr.hbm [resolvable:$true] %s303_s20 }
   0xf   :  { %138 = vmatpush.bf16.msra.mxu0 %v385_v0  ;;  %v383_v2 = vld [vmem:[#allocation7 + $0x28] sm:$0xff]  ;;  %v382_v3 = vld [vmem:[#allocation7 + $0x20] sm:$0xff]  ;;  %v381_v4 = vld [vmem:[#allocation7 + $0x18] sm:$0xff] }
  0x10   :  { %v380_v5 = vld [vmem:[#allocation7 + $0x10] sm:$0xff]  ;;  %v379_v6 = vld [vmem:[#allocation7 + $0x8] sm:$0xff]  ;;  %v378_v7 = vld [vmem:[#allocation7] sm:$0xff] }
  0x11   :  { %v73_v8 = vld [vmem:[#allocation4] sm:$0xf]  ;;  %v392_v18 = vld [vmem:[#allocation9 + $0x30] sm:$0xff]  ;;  %v391_v21 = vld [vmem:[#allocation9 + $0x28] sm:$0xff] }
  0x12   :  { %v393_v15 = vld [vmem:[#allocation9 + $0x38] sm:$0xff]  ;;  %v390_v24 = vld [vmem:[#allocation9 + $0x20] sm:$0xff]  ;;  %v388_v30 = vld [vmem:[#allocation9 + $0x10] sm:$0xff] }
  0x13   :  { %139 = vmatpush.bf16.msra.mxu0 %v384_v1  ;;  %255 = vmatpush.bf16.msra.mxu1 %v393_v15  ;;  %v389_v27 = vld [vmem:[#allocation9 + $0x18] sm:$0xff]  ;;  %v387_v33 = vld [vmem:[#allocation9 + $0x8] sm:$0xff]  ;;  %v386_v35 = vld [vmem:[#allocation9] sm:$0xff] }
  0x14   :  { %v178_v42 = vld [vmem:[%s570_s2] sm:$0x1]  ;;  %s511_s2 = smov [#allocation10]  }
  0x15   :  { %v400_v46 = vld [vmem:[%s571_s3] ss:$0 sm:$0xff]  ;;  %s301_s17 = sshll.u32 %s511_s2, 4  ;;  %s302_s17 = int_to_ptr.vmem [resolvable:$true] %s301_s17 }
  0x16   :  { %v401_v52 = vld [vmem:[%s573_s5] ss:$0 sm:$0xff] }
  0x17   :  { %140 = vmatpush.bf16.msra.mxu0 %v383_v2  ;;  %256 = vmatpush.bf16.msra.mxu1 %v392_v18 }
  0x1b   :  { %141 = vmatpush.bf16.msra.mxu0 %v382_v3  ;;  %257 = vmatpush.bf16.msra.mxu1 %v391_v21 }
  0x1f   :  { %142 = vmatpush.bf16.msra.mxu0 %v381_v4  ;;  %258 = vmatpush.bf16.msra.mxu1 %v390_v24 }
  0x23   :  { %143 = vmatpush.bf16.msra.mxu0 %v380_v5  ;;  %259 = vmatpush.bf16.msra.mxu1 %v389_v27 }
  0x27   :  { %144 = vmatpush.bf16.msra.mxu0 %v379_v6  ;;  %260 = vmatpush.bf16.msra.mxu1 %v388_v30 }
  0x2b   :  { %145 = vmatpush.bf16.msra.mxu0 %v378_v7  ;;  %261 = vmatpush.bf16.msra.mxu1 %v387_v33 }
  0x2e   :  { %146 = vmatmul.bf16.vlgmr.msra.gmra.mxu0 %v73_v8 }
  0x2f   :  { %262 = vmatpush.bf16.msra.mxu1 %v386_v35 }
  0xab   :  { %v147_v9 = vpop.f32.mrf.mxu0 }
  0xac   :  { %v151_v10 = vrot.slane %v147_v9, 4 }
  0xae   :  { %v152_v11 = vadd.f32 %v151_v10, %v147_v9 }
  0xb0   :  { %v153_v12 = vrot.slane %v152_v11, 2 }
  0xb2   :  { %v154_v13 = vadd.f32 %v153_v12, %v152_v11 }
  0xb3   :  { %v149_v14 = vpop.f32.mrf.mxu0 }
  0xb4   :  { %v155_v16 = vrot.slane %v154_v13, 1 }
  0xb6   :  { %v156_v17 = vadd.f32 %v155_v16, %v154_v13 }
  0xb8   :  { %v157_v19 = vmul.f32 0.125, %v156_v17 }
  0xba   :  { %v158_v20 = vsub.f32 %v147_v9, %v157_v19 }
  0xbc   :  { %v159_v22 = vmul.f32 %v158_v20, %v158_v20 }
  0xbe   :  { %v160_v23 = vrot.slane %v159_v22, 4 }
  0xc0   :  { %v161_v25 = vadd.f32 %v160_v23, %v159_v22 }
  0xc2   :  { %v162_v26 = vrot.slane %v161_v25, 2 }
  0xc4   :  { %v163_v28 = vadd.f32 %v162_v26, %v161_v25 }
  0xc6   :  { %v164_v29 = vrot.slane %v163_v28, 1 }
  0xc8   :  { %v165_v31 = vadd.f32 %v164_v29, %v163_v28 }
  0xca   :  { %v166_v32 = vmul.f32 0.125, %v165_v31 }
  0xcc   :  { %v167_v34 = vadd.f32 1e-05, %v166_v32 }
  0xce   :  { %402 = vrsqrt.f32 %v167_v34  ;;  %vm174_vm1 = vweird.f32 %v167_v34 }
  0xd4   :  { %v403_v36 = vpop.eup %402 }
  0xd5   :  { %v169_v37 = vmul.f32 %v403_v36, %v167_v34  ;;  %vm175_vm0 = vweird.f32 %v403_v36 }
  0xd6   :  { %vm176_vm2 = vmor %vm174_vm1, %vm175_vm0 }
  0xd7   :  { %v170_v38 = vmul.f32 %v403_v36, %v169_v37 }
  0xd9   :  { %v171_v39 = vmul.f32 0.5, %v170_v38 }
  0xdb   :  { %v172_v40 = vsub.f32 1.5, %v171_v39 }
  0xdd   :  { %v173_v41 = vmul.f32 %v403_v36, %v172_v40 }
  0xdf   :  { %v177_v43 = vsel %vm176_vm2, %v403_v36, %v173_v41 }
  0xe0   :  { %v179_v44 = vmul.f32 %v178_v42, %v177_v43 }
  0xe2   :  { %v180_v45 = vperm.slane %v179_v44, 0 }
  0xe4   :  { %v181_v47 = vmul.f32 %v180_v45, %v158_v20 }
  0xe6   :  { %v186_v48 = vadd.f32 %v400_v46, %v181_v47 }
  0xe8   :  { %v187_v49 = vmax.f32 %v186_v48, 0.0 }
  0xea   :  { %v188_v50 = vpack.c.bf16 %v187_v49, %v187_v49 }
  0xec   :  { %189 = vst [vmem:[#allocation2] sm:$0xf] %v188_v50 }
  0xf3   :  { %v190_v51 = vld [vmem:[#allocation2] sm:$0xf] }
  0xf4   :  { %263 = vmatmul.bf16.vlgmr.msra.gmra.mxu1 %v190_v51 }
 0x171   :  { %v264_v53 = vpop.f32.mrf.mxu1 }
 0x172   :  { %v294_v54 = vadd.f32 %v401_v52, %v264_v53 }
 0x174   :  { %295 = vst [vmem:[#allocation10] sm:$0xff] %v294_v54 }
 0x175   :  { %306 = dma.vmem_to_hbm [thread:$0]  %s302_s17, 128, %s304_s20, [#allocation6]  }
 0x179   :  { %v266_v55 = vpop.f32.mrf.mxu1 }
 0x17a   :  { %504 = dma.done.wait [#allocation6], 128  }
 0x17b   :  { %505 = vsyncadd [#allocation6], 4294967168 }
 0x17c   :  { %311 = vsyncpa [#allocation5], 1 }
 0x17d   :  { %312 = vsyncpa [#allocation8], 1 }
 0x17e   :  { %313 = vsyncpa [#allocation6], 1 }

</bundles_post_ra>
